<compile_context>
chip_gen: v7x
topology: tpu7x:2x2x1
jax: 0.10.0
libtpu: 0.0.40
codegen_flags: <defaults>
</compile_context>

<pallas_src>
import functools

import jax
import jax.numpy as jnp
from jax.experimental import pallas as pl
from jax.experimental.pallas import tpu as pltpu


def _edge_var_kernel(sq_ref, w_ref, out_ref, acc_ref):
    i = pl.program_id(0)

    # Init the lane accumulator on the first edge tile.
    @pl.when(i == 0)
    def _():
        acc_ref[...] = jnp.zeros_like(acc_ref)

    # --- per-edge math, fully dense [R, 128] vregs ---------------------------
    sq = sq_ref[...]                       # [R, 128] f32, R = tile_e // 128
    eu = jnp.sqrt(sq)                      # [R, 128]
    d = eu - 1.0
    ev_w = d * d * w_ref[...]              # [R, 128]; padding edges have w == 0

    # Sublane reduce into the persistent [1, 128] lane accumulator (VPU adds
    # across vregs + one in-vreg sublane reduce; no cross-lane work here).
    acc_ref[...] += jnp.sum(ev_w, axis=0, keepdims=True)   # [1, 128]

    # --- finalize: single cross-lane reduce on the last tile -----------------
    @pl.when(i == pl.num_programs(0) - 1)
    def _():
        out_ref[...] = jnp.sum(acc_ref[...], axis=1, keepdims=True)   # [1, 1]


@functools.partial(jax.jit, static_argnames=("num_graphs", "tile_e"))
def edge_var(node_pos, edge_index, batch_vec, *, num_graphs, tile_e=16384):
    """node_pos: [N, D] f32, edge_index: [2, E] i32, batch_vec: [N] i32.

    tile_e must be a multiple of 1024 (edges tile as [tile_e/128, 128] blocks,
    so the sublane block dim stays a multiple of 8).
    """
    assert tile_e % 1024 == 0, "tile_e must be a multiple of 1024"

    node_pos = node_pos.astype(jnp.float32)
    src, dst = edge_index[0], edge_index[1]

    # Gather + subtract + square-sum all fuse in XLA; the kernel only streams
    # the pre-squared per-edge norm and a per-edge weight.
    diff = node_pos[dst] - node_pos[src]                       # [E, D]
    sq = jnp.sum(diff * diff, axis=1)                          # [E]
    seg = batch_vec[src].astype(jnp.int32)                     # [E]

    # Per-graph edge counts are position independent: fold the per-graph mean,
    # the empty-graph guard (-> 0, matching scatter-mean) and the final mean
    # over graphs into one per-edge weight via a gather.
    cnt = jnp.zeros((num_graphs,), jnp.float32).at[seg].add(1.0)
    scale = ((cnt > 0).astype(jnp.float32)
             / (jnp.maximum(cnt, 1.0) * float(num_graphs)))    # [G]
    w = scale[seg]                                             # [E]

    e = sq.shape[0]
    e_pad = ((e + tile_e - 1) // tile_e) * tile_e
    rows = tile_e // 128

    # Lane- and sublane-dense layout: [E_pad/128, 128].  Padding edges carry
    # sq = 0 and w = 0, so (sqrt(0)-1)^2 * 0 == 0 and they contribute nothing.
    sq_p = jnp.pad(sq, (0, e_pad - e)).reshape(e_pad // 128, 128)
    w_p = jnp.pad(w, (0, e_pad - e)).reshape(e_pad // 128, 128)

    grid = (e_pad // tile_e,)
    out = pl.pallas_call(
        _edge_var_kernel,
        out_shape=jax.ShapeDtypeStruct((1, 1), jnp.float32),
        grid_spec=pltpu.PrefetchScalarGridSpec(
            num_scalar_prefetch=0,
            grid=grid,
            in_specs=[
                pl.BlockSpec((rows, 128), lambda i: (i, 0)),   # sq [R, 128]
                pl.BlockSpec((rows, 128), lambda i: (i, 0)),   # w  [R, 128]
            ],
            out_specs=pl.BlockSpec((1, 1), lambda i: (0, 0)),
            scratch_shapes=[pltpu.VMEM((1, 128), jnp.float32)],
        ),
        compiler_params=pltpu.CompilerParams(
            dimension_semantics=("arbitrary",)),
    )(sq_p, w_p)
    return out[0, 0]


def _reference(node_pos, edge_index, batch_vec, num_graphs):
    start = node_pos[edge_index[0]]
    end = node_pos[edge_index[1]]
    eu = jnp.linalg.norm(end - start, axis=1)
    ev = (eu - 1.0) ** 2
    seg = batch_vec[edge_index[0]]
    sums = jnp.zeros((num_graphs,), jnp.float32).at[seg].add(ev)
    cnts = jnp.zeros((num_graphs,), jnp.float32).at[seg].add(1.0)
    graph_var = jnp.where(cnts > 0, sums / jnp.maximum(cnts, 1.0), 0.0)
    return jnp.mean(graph_var)


if __name__ == "__main__":
    key = jax.random.PRNGKey(0)
    k1, k2 = jax.random.split(key)

    # --- test 1: tiny hand-built batch (2 graphs, 6 nodes each, 20 edges) ---
    N, D, G = 12, 2, 2
    node_pos = jax.random.normal(k1, (N, D), dtype=jnp.float32)
    batch_vec = jnp.array([0] * 6 + [1] * 6, dtype=jnp.int32)
    src0 = jnp.array([0, 1, 2, 3, 4, 5, 0, 2, 1, 3], dtype=jnp.int32)
    dst0 = jnp.array([1, 2, 3, 4, 5, 0, 3, 5, 4, 0], dtype=jnp.int32)
    edge_index = jnp.stack([jnp.concatenate([src0, src0 + 6]),
                            jnp.concatenate([dst0, dst0 + 6])], axis=0)

    out1 = jax.block_until_ready(
        edge_var(node_pos, edge_index, batch_vec, num_graphs=G))
    ref1 = _reference(node_pos, edge_index, batch_vec, G)
    assert jnp.allclose(out1, ref1, rtol=1e-4, atol=1e-5), (out1, ref1)

    # --- test 2: multi-tile path (4 graphs x 64 nodes, 2800 random edges) ---
    G2, NPG, EPG, D2 = 4, 64, 700, 2
    N2 = G2 * NPG
    k3, k4, k5 = jax.random.split(k2, 3)
    node_pos2 = 2.0 * jax.random.normal(k3, (N2, D2), dtype=jnp.float32)
    batch_vec2 = jnp.repeat(jnp.arange(G2, dtype=jnp.int32), NPG)
    offs = NPG * jnp.arange(G2, dtype=jnp.int32)[:, None]
    src2 = (jax.random.randint(k4, (G2, EPG), 0, NPG) + offs).reshape(-1)
    dst2 = (jax.random.randint(k5, (G2, EPG), 0, NPG) + offs).reshape(-1)
    edge_index2 = jnp.stack([src2, dst2], axis=0).astype(jnp.int32)

    out2 = jax.block_until_ready(
        edge_var(node_pos2, edge_index2, batch_vec2,
                 num_graphs=G2, tile_e=1024))   # grid = (3,), multi-tile
    ref2 = _reference(node_pos2, edge_index2, batch_vec2, G2)
    assert jnp.allclose(out2, ref2, rtol=1e-4, atol=1e-5), (out2, ref2)

    print("KERNEL_OK")
</pallas_src>

<mosaic_0001>
module attributes {stable_mosaic.version = 11 : i64} {
  func.func @_edge_var_kernel(%arg0: i32, %arg1: memref<128x128xf32, #tpu.memory_space<vmem>>, %arg2: memref<128x128xf32, #tpu.memory_space<vmem>>, %arg3: memref<1x1xf32, #tpu.memory_space<vmem>>, %arg4: memref<1x128xf32, #tpu.memory_space<vmem>>) attributes {dimension_semantics = [#tpu.dimension_semantics<arbitrary>], iteration_bounds = array<i64: 1>, scalar_prefetch = 0 : i64, scratch_operands = 1 : i64, tpu.core_type = #tpu.core_type<tc>, window_params = [{transform_indices = @transform_0, window_bounds = array<i64: 128, 128>}, {transform_indices = @transform_1, window_bounds = array<i64: 128, 128>}, {pipeline_mode = #tpu.pipeline_mode<synchronous>, transform_indices = @transform_2, window_bounds = array<i64: 1, 1>}]} {
    %c0_i32 = arith.constant 0 : i32
    %0 = arith.cmpi eq, %arg0, %c0_i32 : i32
    %1 = arith.extui %0 : i1 to i32
    %c0_i32_0 = arith.constant 0 : i32
    %2 = arith.cmpi ne, %1, %c0_i32_0 : i32
    scf.if %2 {
      %cst_11 = arith.constant 0.000000e+00 : f32
      %18 = vector.broadcast %cst_11 : f32 to vector<1x128xf32>
      %c0_12 = arith.constant 0 : index
      %c0_13 = arith.constant 0 : index
      %19 = vector.load %arg4[%c0_12, %c0_13] : memref<1x128xf32, #tpu.memory_space<vmem>>, vector<1x128xf32>
      tpu.vector_store %arg4[%c0_12, %c0_13], %18 {strides = array<i32>} : memref<1x128xf32, #tpu.memory_space<vmem>>, vector<1x128xf32>,
    } else {
    }
    %c0 = arith.constant 0 : index
    %c0_1 = arith.constant 0 : index
    %3 = vector.load %arg1[%c0, %c0_1] : memref<128x128xf32, #tpu.memory_space<vmem>>, vector<128x128xf32>
    %4 = math.sqrt %3 : vector<128x128xf32>
    %cst = arith.constant 1.000000e+00 : f32
    %5 = vector.broadcast %cst : f32 to vector<128x128xf32>
    %6 = arith.subf %4, %5 : vector<128x128xf32>
    %7 = arith.mulf %6, %6 : vector<128x128xf32>
    %c0_2 = arith.constant 0 : index
    %c0_3 = arith.constant 0 : index
    %8 = vector.load %arg2[%c0_2, %c0_3] : memref<128x128xf32, #tpu.memory_space<vmem>>, vector<128x128xf32>
    %9 = arith.mulf %7, %8 : vector<128x128xf32>
    %c0_4 = arith.constant 0 : index
    %c0_5 = arith.constant 0 : index
    %10 = vector.load %arg4[%c0_4, %c0_5] : memref<1x128xf32, #tpu.memory_space<vmem>>, vector<1x128xf32>
    %cst_6 = arith.constant dense<0.000000e+00> : vector<128xf32>
    %11 = vector.multi_reduction <add>, %9, %cst_6 [0] : vector<128x128xf32> to vector<128xf32>
    %12 = vector.shape_cast %11 : vector<128xf32> to vector<1x128xf32>
    %13 = arith.addf %10, %12 : vector<1x128xf32>
    %c0_7 = arith.constant 0 : index
    %c0_8 = arith.constant 0 : index
    %14 = vector.load %arg4[%c0_7, %c0_8] : memref<1x128xf32, #tpu.memory_space<vmem>>, vector<1x128xf32>
    tpu.vector_store %arg4[%c0_7, %c0_8], %13 {strides = array<i32>} : memref<1x128xf32, #tpu.memory_space<vmem>>, vector<1x128xf32>,
    %c0_i32_9 = arith.constant 0 : i32
    %15 = arith.cmpi eq, %arg0, %c0_i32_9 : i32
    %16 = arith.extui %15 : i1 to i32
    %c0_i32_10 = arith.constant 0 : i32
    %17 = arith.cmpi ne, %16, %c0_i32_10 : i32
    scf.if %17 {
      %c0_11 = arith.constant 0 : index
      %c0_12 = arith.constant 0 : index
      %18 = vector.load %arg4[%c0_11, %c0_12] : memref<1x128xf32, #tpu.memory_space<vmem>>, vector<1x128xf32>
      %cst_13 = arith.constant dense<0.000000e+00> : vector<1xf32>
      %19 = vector.multi_reduction <add>, %18, %cst_13 [1] : vector<1x128xf32> to vector<1xf32>
      %20 = vector.shape_cast %19 : vector<1xf32> to vector<1x1xf32>
      %c0_14 = arith.constant 0 : index
      %c0_15 = arith.constant 0 : index
      %21 = vector.load %arg3[%c0_14, %c0_15] : memref<1x1xf32, #tpu.memory_space<vmem>>, vector<1x1xf32>
      tpu.vector_store %arg3[%c0_14, %c0_15], %20 {strides = array<i32>} : memref<1x1xf32, #tpu.memory_space<vmem>>, vector<1x1xf32>,
    } else {
    }
    return
  }
  func.func @transform_0(%arg0: i32) -> (i32, i32) {
    %c0_i32 = arith.constant 0 : i32
    %c0_i32_0 = arith.constant 0 : i32
    return %arg0, %c0_i32 : i32, i32
  }
  func.func @transform_1(%arg0: i32) -> (i32, i32) {
    %c0_i32 = arith.constant 0 : i32
    %c0_i32_0 = arith.constant 0 : i32
    return %arg0, %c0_i32 : i32, i32
  }
  func.func @transform_2(%arg0: i32) -> (i32, i32) {
    %c0_i32 = arith.constant 0 : i32
    %c0_i32_0 = arith.constant 0 : i32
    %c0_i32_1 = arith.constant 0 : i32
    return %c0_i32, %c0_i32_0 : i32, i32
  }
}

</mosaic_0001>

<bundles_post_ra>
// kernel: edge_var.1
= control target key start
LH: loop header
LB: loop body
LE: loop exit
PB: predicated region body
PF: predicated region fallthrough
CT: control target
= control target key end

     0   :  { %7 = vsyncpa [#allocation4], 0  ;;  %v331_v0 = vmov 0.0   ;;  %s642_s0 = inlined_call_operand.vmem [shape: f32[128,128], index: 0, kind: input, shape index: {}]   ;;  %s643_s1 = inlined_call_operand.vmem [shape: f32[128,128], index: 1, kind: input, shape index: {}]   ;;  %s644_s2 = inlined_call_operand.hbm [shape: f32[1,1], index: 2, kind: output, shape index: {}]  }
   0x1   :  { %16 = vst [vmem:[#allocation2] sm:$0x1] %v331_v0  ;;  %v351_v1 = vld [vmem:[%s642_s0] sm:$0xff]  ;;  %v356_v2 = vld [vmem:[%s642_s0 + $0x8] sm:$0xff]  ;;  %v361_v3 = vld [vmem:[%s642_s0 + $0x10] sm:$0xff] }
   0x2   :  { %275 = vrsqrt.f32 %v351_v1  ;;  %v368_v4 = vld [vmem:[%s642_s0 + $0x18] sm:$0xff]  ;;  %v374_v5 = vld [vmem:[%s642_s0 + $0x20] sm:$0xff]  ;;  %v380_v6 = vld [vmem:[%s642_s0 + $0x28] sm:$0xff]  ;;  %vm35_vm0 = vcmp.eq.f32.partialorder %v351_v1, inf  ;;  %vm37_vm1 = vcmp.eq.f32.partialorder %v351_v1, 0.0  ;;  %v38_v14 = vand.u32 2147483648, %v351_v1 }
   0x3   :  { %277 = vrsqrt.f32 %v356_v2  ;;  %v386_v7 = vld [vmem:[%s642_s0 + $0x30] sm:$0xff]  ;;  %v391_v8 = vld [vmem:[%s642_s0 + $0x38] sm:$0xff]  ;;  %v397_v10 = vld [vmem:[%s642_s0 + $0x40] sm:$0xff]  ;;  %vm42_vm2 = vcmp.eq.f32.partialorder %v356_v2, inf  ;;  %vm44_vm3 = vcmp.eq.f32.partialorder %v356_v2, 0.0  ;;  %v45_v20 = vand.u32 2147483648, %v356_v2 }
   0x4   :  { %279 = vrsqrt.f32 %v361_v3  ;;  %v402_v12 = vld [vmem:[%s642_s0 + $0x48] sm:$0xff]  ;;  %v414_v15 = vld [vmem:[%s642_s0 + $0x50] sm:$0xff]  ;;  %v423_v19 = vld [vmem:[%s642_s0 + $0x58] sm:$0xff]  ;;  %vm49_vm4 = vcmp.eq.f32.partialorder %v361_v3, inf  ;;  %vm51_vm5 = vcmp.eq.f32.partialorder %v361_v3, 0.0  ;;  %v52_v21 = vand.u32 2147483648, %v361_v3 }
   0x5   :  { %281 = vrsqrt.f32 %v368_v4  ;;  %vm56_vm6 = vcmp.eq.f32.partialorder %v368_v4, inf  ;;  %vm58_vm7 = vcmp.eq.f32.partialorder %v368_v4, 0.0  ;;  %v59_v23 = vand.u32 2147483648, %v368_v4  ;;  %v436_v25 = vld [vmem:[%s642_s0 + $0x60] sm:$0xff]  ;;  %v457_v32 = vld [vmem:[%s642_s0 + $0x68] sm:$0xff]  ;;  %v486_v47 = vld [vmem:[%s642_s0 + $0x70] sm:$0xff] }
   0x6   :  { %283 = vrsqrt.f32 %v374_v5  ;;  %vm63_vm8 = vcmp.eq.f32.partialorder %v374_v5, inf  ;;  %vm65_vm9 = vcmp.eq.f32.partialorder %v374_v5, 0.0  ;;  %v66_v26 = vand.u32 2147483648, %v374_v5  ;;  %v502_v55 = vld [vmem:[%s642_s0 + $0x78] sm:$0xff] }
   0x7   :  { %285 = vrsqrt.f32 %v380_v6  ;;  %vm70_vm10 = vcmp.eq.f32.partialorder %v380_v6, inf  ;;  %vm72_vm11 = vcmp.eq.f32.partialorder %v380_v6, 0.0  ;;  %v73_v31 = vand.u32 2147483648, %v380_v6 }
   0x8   :  { %287 = vrsqrt.f32 %v386_v7  ;;  %vm77_vm12 = vcmp.eq.f32.partialorder %v386_v7, inf  ;;  %vm79_vm13 = vcmp.eq.f32.partialorder %v386_v7, 0.0  ;;  %v80_v38 = vand.u32 2147483648, %v386_v7 }
   0x9   :  { %289 = vrsqrt.f32 %v391_v8  ;;  %vm84_vm14 = vcmp.eq.f32.partialorder %v391_v8, inf  ;;  %vm86_vm15 = vcmp.eq.f32.partialorder %v391_v8, 0.0  ;;  %v87_v42 = vand.u32 2147483648, %v391_v8 }
   0xa   :  { %291 = vrsqrt.f32 %v397_v10  ;;  %v94_v45 = vand.u32 2147483648, %v397_v10  ;;  %v101_v53 = vand.u32 2147483648, %v402_v12  ;;  %v108_v54 = vand.u32 2147483648, %v414_v15 }
   0xb   :  { %293 = vrsqrt.f32 %v402_v12 }
   0xc   :  { %v276_v9 = vpop.eup %275  ;;  %295 = vrsqrt.f32 %v414_v15 }
   0xd   :  { %v278_v11 = vpop.eup %277  ;;  %v34_v16 = vmul.f32 %v276_v9, %v351_v1  ;;  %297 = vrsqrt.f32 %v423_v19  ;;  %v177_v9 = vld [vmem:[%s643_s1] sm:$0xff] }
   0xe   :  { %v280_v13 = vpop.eup %279  ;;  %v41_v17 = vmul.f32 %v278_v11, %v356_v2  ;;  %299 = vrsqrt.f32 %v436_v25  ;;  %v178_v11 = vld [vmem:[%s643_s1 + $0x8] sm:$0xff] }
   0xf   :  { %v282_v18 = vpop.eup %281  ;;  %v48_v22 = vmul.f32 %v280_v13, %v361_v3  ;;  %v36_v27 = vsel %vm35_vm0, %v351_v1, %v34_v16  ;;  %vm91_vm0 = vcmp.eq.f32.partialorder %v397_v10, inf  ;;  %301 = vrsqrt.f32 %v457_v32 }
  0x10   :  { %v284_v24 = vpop.eup %283  ;;  %v43_v28 = vsel %vm42_vm2, %v356_v2, %v41_v17  ;;  %v55_v29 = vmul.f32 %v282_v18, %v368_v4  ;;  %v39_v36 = vsel %vm37_vm1, %v38_v14, %v36_v27  ;;  %vm98_vm1 = vcmp.eq.f32.partialorder %v402_v12, inf }
  0x11   :  { %v286_v30 = vpop.eup %285  ;;  %v50_v33 = vsel %vm49_vm4, %v361_v3, %v48_v22  ;;  %v62_v34 = vmul.f32 %v284_v24, %v374_v5  ;;  %v46_v37 = vsel %vm44_vm3, %v45_v20, %v43_v28  ;;  %vm93_vm2 = vcmp.eq.f32.partialorder %v397_v10, 0.0 }
  0x12   :  { %v288_v35 = vpop.eup %287  ;;  %v57_v40 = vsel %vm56_vm6, %v368_v4, %v55_v29  ;;  %v69_v41 = vmul.f32 %v286_v30, %v380_v6  ;;  %v53_v44 = vsel %vm51_vm5, %v52_v21, %v50_v33  ;;  %vm100_vm3 = vcmp.eq.f32.partialorder %v402_v12, 0.0 }
  0x13   :  { %v290_v39 = vpop.eup %289  ;;  %v64_v48 = vsel %vm63_vm8, %v374_v5, %v62_v34  ;;  %v76_v49 = vmul.f32 %v288_v35, %v386_v7  ;;  %v257_v50 = vadd.f32 -1.0, %v39_v36  ;;  %v258_v51 = vadd.f32 -1.0, %v46_v37 }
  0x14   :  { %v292_v43 = vpop.eup %291  ;;  %v60_v52 = vsel %vm58_vm7, %v59_v23, %v57_v40  ;;  %vm105_vm4 = vcmp.eq.f32.partialorder %v414_v15, inf  ;;  %v71_v56 = vsel %vm70_vm10, %v380_v6, %v69_v41  ;;  %v83_v57 = vmul.f32 %v290_v39, %v391_v8  ;;  %v179_v23 = vld [vmem:[%s643_s1 + $0x10] sm:$0xff]  ;;  %v181_v40 = vld [vmem:[%s643_s1 + $0x20] sm:$0xff] }
  0x15   :  { %v294_v46 = vpop.eup %293  ;;  %vm107_vm5 = vcmp.eq.f32.partialorder %v414_v15, 0.0  ;;  %vm112_vm6 = vcmp.eq.f32.partialorder %v423_v19, inf  ;;  %v259_v58 = vadd.f32 -1.0, %v53_v44  ;;  %v67_v60 = vsel %vm65_vm9, %v66_v26, %v64_v48  ;;  %v182_v48 = vld [vmem:[%s643_s1 + $0x28] sm:$0xff] }
  0x16   :  { %v296_v59 = vpop.eup %295  ;;  %v90_v61 = vmul.f32 %v292_v43, %v397_v10  ;;  %v97_v62 = vmul.f32 %v294_v46, %v402_v12  ;;  %303 = vrsqrt.f32 %v486_v47  ;;  %v78_v0 = vsel %vm77_vm12, %v386_v7, %v76_v49 }
  0x17   :  { %v298_v63 = vpop.eup %297  ;;  %v260_v1 = vadd.f32 -1.0, %v60_v52  ;;  %v161_v2 = vmul.f32 %v257_v50, %v257_v50  ;;  %v162_v3 = vmul.f32 %v258_v51, %v258_v51  ;;  %v74_v4 = vsel %vm72_vm11, %v73_v31, %v71_v56  ;;  %v180_v31 = vld [vmem:[%s643_s1 + $0x18] sm:$0xff] }
  0x18   :  { %vm114_vm7 = vcmp.eq.f32.partialorder %v423_v19, 0.0  ;;  %v115_v5 = vand.u32 2147483648, %v423_v19  ;;  %305 = vrsqrt.f32 %v502_v55  ;;  %v300_v13 = vpop.eup %299  ;;  %v85_v6 = vsel %vm84_vm14, %v391_v8, %v83_v57  ;;  %v183_v57 = vld [vmem:[%s643_s1 + $0x30] sm:$0xff] }
  0x19   :  { %v104_v14 = vmul.f32 %v296_v59, %v414_v15  ;;  %v261_v16 = vadd.f32 -1.0, %v67_v60  ;;  %v163_v17 = vmul.f32 %v259_v58, %v259_v58  ;;  %v81_v18 = vsel %vm79_vm13, %v80_v38, %v78_v0  ;;  %v302_v7 = vpop.eup %301  ;;  %v184_v0 = vld [vmem:[%s643_s1 + $0x38] sm:$0xff] }
  0x1a   :  { %v92_v20 = vsel %vm91_vm0, %v397_v10, %v90_v61  ;;  %v99_v21 = vsel %vm98_vm1, %v402_v12, %v97_v62  ;;  %v111_v22 = vmul.f32 %v298_v63, %v423_v19  ;;  %v262_v24 = vadd.f32 -1.0, %v74_v4 }
  0x1b   :  { %v164_v26 = vmul.f32 %v260_v1, %v260_v1  ;;  %v193_v27 = vmul.f32 %v177_v9, %v161_v2  ;;  %v194_v28 = vmul.f32 %v178_v11, %v162_v3  ;;  %v88_v29 = vsel %vm86_vm15, %v87_v42, %v85_v6  ;;  %v185_v9 = vld [vmem:[%s643_s1 + $0x40] sm:$0xff] }
  0x1c   :  { %v118_v30 = vmul.f32 %v300_v13, %v436_v25  ;;  %vm119_vm8 = vcmp.eq.f32.partialorder %v436_v25, inf  ;;  %vm121_vm9 = vcmp.eq.f32.partialorder %v436_v25, 0.0  ;;  %v106_v33 = vsel %vm105_vm4, %v414_v15, %v104_v14 }
  0x1d   :  { %v263_v34 = vadd.f32 -1.0, %v81_v18  ;;  %v165_v35 = vmul.f32 %v261_v16, %v261_v16  ;;  %v195_v36 = vmul.f32 %v179_v23, %v163_v17  ;;  %v95_v8 = vsel %vm93_vm2, %v94_v45, %v92_v20  ;;  %v186_v20 = vld [vmem:[%s643_s1 + $0x48] sm:$0xff] }
  0x1e   :  { %v102_v37 = vsel %vm100_vm3, %v101_v53, %v99_v21  ;;  %v113_v38 = vsel %vm112_vm6, %v423_v19, %v111_v22  ;;  %v122_v39 = vand.u32 2147483648, %v436_v25  ;;  %v264_v41 = vadd.f32 -1.0, %v88_v29 }
  0x1f   :  { %v166_v42 = vmul.f32 %v262_v24, %v262_v24  ;;  %v196_v43 = vmul.f32 %v180_v31, %v164_v26  ;;  %v210_v44 = vadd.f32 %v194_v28, %v193_v27  ;;  %v109_v10 = vsel %vm107_vm5, %v108_v54, %v106_v33  ;;  %v188_v31 = vld [vmem:[%s643_s1 + $0x58] sm:$0xff] }
  0x20   :  { %v304_v46 = vpop.eup %303  ;;  %v120_v12 = vsel %vm119_vm8, %v436_v25, %v118_v30  ;;  %v125_v45 = vmul.f32 %v302_v7, %v457_v32  ;;  %vm126_vm10 = vcmp.eq.f32.partialorder %v457_v32, inf  ;;  %v265_v49 = vadd.f32 -1.0, %v95_v8 }
  0x21   :  { %v167_v50 = vmul.f32 %v263_v34, %v263_v34  ;;  %v197_v51 = vmul.f32 %v181_v40, %v165_v35  ;;  %v211_v52 = vadd.f32 %v210_v44, %v195_v36  ;;  %v116_v15 = vsel %vm114_vm7, %v115_v5, %v113_v38 }
  0x22   :  { %v306_v53 = vpop.eup %305  ;;  %vm128_vm11 = vcmp.eq.f32.partialorder %v457_v32, 0.0  ;;  %v129_v54 = vand.u32 2147483648, %v457_v32  ;;  %v266_v56 = vadd.f32 -1.0, %v102_v37  ;;  %v132_v58 = vmul.f32 %v304_v46, %v486_v47 }
  0x23   :  { %v168_v59 = vmul.f32 %v264_v41, %v264_v41  ;;  %v198_v60 = vmul.f32 %v182_v48, %v166_v42  ;;  %v212_v61 = vadd.f32 %v211_v52, %v196_v43  ;;  %v123_v62 = vsel %vm121_vm9, %v122_v39, %v120_v12  ;;  %v190_v39 = vld [vmem:[%s643_s1 + $0x68] sm:$0xff]  ;;  %v191_v43 = vld [vmem:[%s643_s1 + $0x70] sm:$0xff]  ;;  %v192_v12 = vld [vmem:[%s643_s1 + $0x78] sm:$0xff] }
  0x24   :  { %v127_v19 = vsel %vm126_vm10, %v457_v32, %v125_v45  ;;  %vm133_vm12 = vcmp.eq.f32.partialorder %v486_v47, inf  ;;  %v267_v63 = vadd.f32 -1.0, %v109_v10  ;;  %v139_v1 = vmul.f32 %v306_v53, %v502_v55  ;;  %v187_v32 = vld [vmem:[%s643_s1 + $0x50] sm:$0xff] }
  0x25   :  { %v169_v2 = vmul.f32 %v265_v49, %v265_v49  ;;  %v199_v3 = vmul.f32 %v183_v57, %v167_v50  ;;  %v213_v4 = vadd.f32 %v212_v61, %v197_v51  ;;  %vm135_vm13 = vcmp.eq.f32.partialorder %v486_v47, 0.0 }
  0x26   :  { %v136_v25 = vand.u32 2147483648, %v486_v47  ;;  %vm140_vm14 = vcmp.eq.f32.partialorder %v502_v55, inf  ;;  %v268_v5 = vadd.f32 -1.0, %v116_v15  ;;  %v134_v11 = vsel %vm133_vm12, %v486_v47, %v132_v58  ;;  %v189_v47 = vld [vmem:[%s643_s1 + $0x60] sm:$0xff]  ;;  %s332_s1 = smov [#allocation3]  }
  0x27   :  { %v170_v13 = vmul.f32 %v266_v56, %v266_v56  ;;  %v200_v6 = vmul.f32 %v184_v0, %v168_v59  ;;  %v214_v14 = vadd.f32 %v213_v4, %v198_v60  ;;  %v130_v16 = vsel %vm128_vm11, %v129_v54, %v127_v19  ;;  %v209_v58 = vld [vmem:[#allocation2] sm:$0x1]  ;;  %s249_s15 = sshll.u32 %s332_s1, 4  ;;  %s250_s15 = int_to_ptr.vmem [resolvable:$true] %s249_s15 }
  0x28   :  { %vm142_vm15 = vcmp.eq.f32.partialorder %v502_v55, 0.0  ;;  %v143_v17 = vand.u32 2147483648, %v502_v55  ;;  %v269_v18 = vadd.f32 -1.0, %v123_v62  ;;  %v141_v21 = vsel %vm140_vm14, %v502_v55, %v139_v1  ;;  %s307_s16 = scalar_lea.vmem %s250_s15, 16  ;;  %s311_s17 = scalar_lea.vmem %s250_s15, 32 }
  0x29   :  { %v171_v22 = vmul.f32 %v267_v63, %v267_v63  ;;  %v201_v23 = vmul.f32 %v185_v9, %v169_v2  ;;  %v215_v24 = vadd.f32 %v214_v14, %v199_v3  ;;  %v137_v26 = vsel %vm135_vm13, %v136_v25, %v134_v11  ;;  %p308_p0 = scmp.ne.s32.totalorder %s250_s15, %s307_s16  ;;  %p312_p1 = scmp.lt.s32.totalorder %s250_s15, %s250_s15 }
  0x2a   :  { %v270_v27 = vadd.f32 -1.0, %v130_v16  ;;  %v172_v28 = vmul.f32 %v268_v5, %v268_v5  ;;  %v202_v7 = vmul.f32 %v186_v20, %v170_v13  ;;  %v144_v30 = vsel %vm142_vm15, %v143_v17, %v141_v21  ;;  %p313_p2 = scmp.lt.s32.totalorder %s311_s17, %s307_s16 }
  0x2b   :  { %v216_v29 = vadd.f32 %v215_v24, %v200_v6  ;;  %v271_v55 = vadd.f32 -1.0, %v137_v26  ;;  %v173_v33 = vmul.f32 %v269_v18, %v269_v18  ;;  %v203_v34 = vmul.f32 %v187_v32, %v171_v22 }
  0x2c   :  { %v272_v36 = vadd.f32 -1.0, %v144_v30  ;;  %v174_v8 = vmul.f32 %v270_v27, %v270_v27  ;;  %v204_v37 = vmul.f32 %v188_v31, %v172_v28  ;;  %vm237_vm0 = vcmask 1040384   ;;  %p314_p3 = por %p313_p2, %p312_p1 }
  0x2d   :  { %v217_v35 = vadd.f32 %v216_v29, %v201_v23  ;;  %v175_v40 = vmul.f32 %v271_v55, %v271_v55  ;;  %v205_v41 = vmul.f32 %v189_v47, %v173_v33  ;;  %vm241_vm1 = vcmask 0  }
  0x2e   :  { %v176_v44 = vmul.f32 %v272_v36, %v272_v36  ;;  %v206_v46 = vmul.f32 %v190_v39, %v174_v8  ;;  %p315_p4 = pnand %p314_p3, %p308_p0 }
  0x2f   :  { %v218_v38 = vadd.f32 %v217_v35, %v202_v7  ;;  %v207_v45 = vmul.f32 %v191_v43, %v175_v40 }
  0x30   :  { %v208_v49 = vmul.f32 %v192_v12, %v176_v44 }
  0x31   :  { %v219_v42 = vadd.f32 %v218_v38, %v203_v34 }
  0x33   :  { %v220_v10 = vadd.f32 %v219_v42, %v204_v37 }
  0x35   :  { %v221_v48 = vadd.f32 %v220_v10, %v205_v41 }
  0x37   :  { %v222_v50 = vadd.f32 %v221_v48, %v206_v46 }
  0x39   :  { %v223_v51 = vadd.f32 %v222_v50, %v207_v45 }
  0x3b   :  { %v224_v52 = vadd.f32 %v223_v51, %v208_v49 }
  0x3d   :  { %v225_v53 = vrot.slane %v224_v52, 4 }
  0x3f   :  { %v226_v15 = vadd.f32 %v225_v53, %v224_v52 }
  0x41   :  { %v227_v54 = vrot.slane %v226_v15, 2 }
  0x43   :  { %v228_v56 = vadd.f32 %v227_v54, %v226_v15 }
  0x45   :  { %v229_v57 = vrot.slane %v228_v56, 1 }
  0x47   :  { %v230_v59 = vadd.f32 %v229_v57, %v228_v56 }
  0x49   :  { %v231_v60 = vadd.f32 %v230_v59, %v209_v58 }
  0x4b   :  { %232 = vst [vmem:[#allocation2] sm:$0x1] %v231_v60 }
  0x52   :  { %v236_v61 = vld [vmem:[#allocation2] sm:$0x1] }
  0x53   :  { %v238_v62 = vsel %vm237_vm0, %v236_v61, 0.0 }
  0x54   :  { %239 = vadd.xlane.f32.xlu0 %v238_v62 }
  0xe1   :  { %v240_v19 = vpop.xlane.xlu0 %239 }
  0xe2   :  { %242 = vst.msk [vmem:[#allocation3] sm:$0x1] %vm241_vm1, %v240_v19 }
  0xe3   :  { %318 = shalt.err (!%p315_p4)
}
  0xe4   :  { %s319_s20 = scalar_lea.hbm %s644_s2, 16 }
  0xe5   :  { %p320_p5 = scmp.ne.s32.totalorder %s644_s2, %s319_s20  ;;  %p323_p6 = scmp.lt.u32.totalorder %s319_s20, %s644_s2 }
  0xe7   :  { %p325_p7 = pnand %p323_p6, %p320_p5 }
  0xe9   :  { %328 = shalt.err (!%p325_p7)
}
  0xea   :  { %252 = dma.vmem_to_hbm [thread:$0]  %s250_s15, 16, %s644_s2, [#allocation4]  }
  0xeb   :  { %329 = dma.done.wait [#allocation4], 16  }
  0xec   :  { %330 = vsyncadd [#allocation4], 4294967280 }
  0xed   :  { %256 = vsyncpa [#allocation4], 1 }

</bundles_post_ra>
